<compile_context>
chip_gen: v6e
topology: v6e:2x2x1
jax: 0.10.0
libtpu: 0.0.40
codegen_flags: <defaults>
</compile_context>

<pallas_src>
import math

import jax
import jax.numpy as jnp
from jax import lax
from jax.experimental import pallas as pl
from jax.experimental.pallas import tpu as pltpu


# ------------------------------ fused kernel ------------------------------- #

def _mha_head_kernel(x_ref, wq_ref, wk_ref, wv_ref, bq_ref, bk_ref, bv_ref,
                     wp_ref, bp_ref, o_ref):
    """One (batch, head) pair per grid step.

    x_ref:  (1, S, D)  bf16 activations            (constant across the head axis)
    wq/wk/wv_ref: (1, D, d) bf16 per-head weights  (streamed per step)
    bq/bk/bv_ref: (1, 1, d) f32  per-head biases
    wp_ref: (1, d, D)  bf16 per-head c_proj rows
    bp_ref: (1, D)     f32  c_proj bias
    o_ref:  (1, S, D)  f32 output, accumulated across the head (reduction) axis
    """
    h = pl.program_id(1)

    x = x_ref[0]                                                        # (S, D) bf16

    # Per-head q/k/v: full-D contraction on the MXU, f32 accumulate + bias.
    q = jnp.dot(x, wq_ref[0], preferred_element_type=jnp.float32) + bq_ref[0]  # (S, d)
    k = jnp.dot(x, wk_ref[0], preferred_element_type=jnp.float32) + bk_ref[0]
    v = jnp.dot(x, wv_ref[0], preferred_element_type=jnp.float32) + bv_ref[0]

    # scores = q @ k^T without materializing a transpose (contract last dims of both).
    s = lax.dot_general(q.astype(jnp.bfloat16), k.astype(jnp.bfloat16),
                        dimension_numbers=(((1,), (1,)), ((), ())),
                        preferred_element_type=jnp.float32)             # (S, S) f32

    # Numerically stable softmax, f32 math; normalization reassociated so the (S,S)
    # inv-broadcast multiply becomes an (S,d) multiply after e @ v.
    s = s - jnp.max(s, axis=-1, keepdims=True)
    e = jnp.exp(s)
    inv = pl.reciprocal(jnp.sum(e, axis=-1, keepdims=True), approx=True)  # (S, 1)
    a = jnp.dot(e.astype(jnp.bfloat16), v.astype(jnp.bfloat16),
                preferred_element_type=jnp.float32) * inv                # (S, d) f32
    # TODO(synk): attn_dropout is identity here (eval mode).

    # c_proj accumulated per head: every store to o_ref is a lane-dense (S, D) write.
    partial = jnp.dot(a.astype(jnp.bfloat16), wp_ref[0],
                      preferred_element_type=jnp.float32)                # (S, D) f32

    @pl.when(h == 0)
    def _init():
        o_ref[0] = partial + bp_ref[...]

    @pl.when(h > 0)
    def _accumulate():
        o_ref[0] = o_ref[0] + partial
    # TODO(synk): resid_dropout is identity here (eval mode).


# ------------------------------ module wrapper ----------------------------- #

def _vmem_limit_bytes():
    """Generation-aware VMEM cap: ~75% of physical (≈48 MiB v7x, ≈96 MiB v5e/v6e)."""
    try:
        cap = int(pltpu.get_tpu_info().vmem_capacity_bytes)
    except Exception:
        cap = 64 * 1024 * 1024
    return max(32 * 1024 * 1024, cap * 3 // 4)


def init_params(key, d_embed):
    """Matches Conv1D.__init__: w ~ N(0, 0.02), b = 0 (stored in f32)."""
    k1, k2 = jax.random.split(key)
    return {
        "c_attn_w": 0.02 * jax.random.normal(k1, (d_embed, 3 * d_embed), jnp.float32),
        "c_attn_b": jnp.zeros((3 * d_embed,), jnp.float32),
        "c_proj_w": 0.02 * jax.random.normal(k2, (d_embed, d_embed), jnp.float32),
        "c_proj_b": jnp.zeros((d_embed,), jnp.float32),
    }


def attention_multihead_forward(params, x, n_head, scale=False):
    """x: (B, S, D) -> (B, S, D).  Mirrors AttentionMultiHead.forward(query)."""
    B, S, D = x.shape
    H = n_head
    assert D % H == 0
    d = D // H

    # ---- one-time host-side weight prep (head-major blocks, bf16 for the MXU) ----
    w_attn, b_attn = params["c_attn_w"], params["c_attn_b"]
    wq, wk, wv = w_attn[:, :D], w_attn[:, D:2 * D], w_attn[:, 2 * D:]
    bq, bk, bv = b_attn[:D], b_attn[D:2 * D], b_attn[2 * D:]
    if scale:
        # fold 1/sqrt(d_head) into the q projection (zero in-kernel cost)
        r = 1.0 / math.sqrt(d)
        wq, bq = wq * r, bq * r

    def w_heads(w):                      # (D, D) -> (H, D, d) bf16, head-major
        return jnp.transpose(w.reshape(D, H, d), (1, 0, 2)).astype(jnp.bfloat16)

    def b_heads(b):                      # (D,) -> (H, 1, d) f32
        return b.reshape(H, 1, d).astype(jnp.float32)

    wq_h, wk_h, wv_h = w_heads(wq), w_heads(wk), w_heads(wv)
    bq_h, bk_h, bv_h = b_heads(bq), b_heads(bk), b_heads(bv)
    wp_h = params["c_proj_w"].reshape(H, d, D).astype(jnp.bfloat16)      # (H, d, D)
    bp = params["c_proj_b"].reshape(1, D).astype(jnp.float32)            # (1, D)
    x_bf = x.astype(jnp.bfloat16)        # halve activation HBM traffic

    # Advisory cost estimate so XLA does not treat the fused call as free.
    flops = (2 * B * S * D * 3 * D        # q/k/v projections
             + 4 * B * S * S * D          # scores + attn@v over all heads
             + 2 * B * S * D * D)         # output projection
    transcendentals = B * H * S * S
    bytes_accessed = (B * S * D * 2 + B * S * D * 4      # bf16 in, f32 out
                      + 4 * D * D * 2 + 4 * D * 4)       # bf16 weights, f32 biases

    return pl.pallas_call(
        _mha_head_kernel,
        out_shape=jax.ShapeDtypeStruct((B, S, D), jnp.float32),
        grid=(B, H),
        in_specs=[
            pl.BlockSpec((1, S, D), lambda b, h: (b, 0, 0)),   # x (re-used across h)
            pl.BlockSpec((1, D, d), lambda b, h: (h, 0, 0)),   # Wq head block
            pl.BlockSpec((1, D, d), lambda b, h: (h, 0, 0)),   # Wk head block
            pl.BlockSpec((1, D, d), lambda b, h: (h, 0, 0)),   # Wv head block
            pl.BlockSpec((1, 1, d), lambda b, h: (h, 0, 0)),   # bq head block
            pl.BlockSpec((1, 1, d), lambda b, h: (h, 0, 0)),   # bk head block
            pl.BlockSpec((1, 1, d), lambda b, h: (h, 0, 0)),   # bv head block
            pl.BlockSpec((1, d, D), lambda b, h: (h, 0, 0)),   # Wproj head rows
            pl.BlockSpec((1, D), lambda b, h: (0, 0)),         # bproj (constant)
        ],
        out_specs=pl.BlockSpec((1, S, D), lambda b, h: (b, 0, 0)),
        compiler_params=pltpu.CompilerParams(
            dimension_semantics=("parallel", "arbitrary"),     # B parallel, H reduction
            vmem_limit_bytes=_vmem_limit_bytes()),
        cost_estimate=pl.CostEstimate(flops=flops,
                                      transcendentals=transcendentals,
                                      bytes_accessed=bytes_accessed),
    )(x_bf, wq_h, wk_h, wv_h, bq_h, bk_h, bv_h, wp_h, bp)


# --------------------------- pure-JAX f32 reference ------------------------ #

def _reference(params, x, n_head, scale=False):
    B, S, D = x.shape
    d = D // n_head
    qkv = x.reshape(B * S, D) @ params["c_attn_w"] + params["c_attn_b"]
    q, k, v = jnp.split(qkv.reshape(B, S, 3 * D), 3, axis=-1)
    sh = lambda t: t.reshape(B, S, n_head, d).transpose(0, 2, 1, 3)
    q, k, v = sh(q), sh(k), sh(v)
    w = jnp.einsum("bhqd,bhkd->bhqk", q, k)
    if scale:
        w = w / math.sqrt(d)
    w = jax.nn.softmax(w, axis=-1)
    a = jnp.einsum("bhqk,bhkd->bhqd", w, v)
    a = a.transpose(0, 2, 1, 3).reshape(B * S, D)
    return (a @ params["c_proj_w"] + params["c_proj_b"]).reshape(B, S, D)


if __name__ == "__main__":
    B, S, D, H = 2, 8, 32, 4          # batch, seq, d_embed, n_head  (d_head = 8)

    key = jax.random.PRNGKey(0)
    pkey, xkey, b1key, b2key = jax.random.split(key, 4)
    params = init_params(pkey, D)
    # Non-zero biases so the bias paths are actually exercised (module init is zeros,
    # but trained checkpoints are not).
    params["c_attn_b"] = 0.05 * jax.random.normal(b1key, (3 * D,), jnp.float32)
    params["c_proj_b"] = 0.05 * jax.random.normal(b2key, (D,), jnp.float32)
    x = jax.random.normal(xkey, (B, S, D), jnp.float32)

    for scale in (False, True):
        out = jax.block_until_ready(
            attention_multihead_forward(params, x, n_head=H, scale=scale))
        ref = _reference(params, x, n_head=H, scale=scale)
        assert out.shape == (B, S, D)
        # bf16 MXU operands + approx reciprocal vs f32 reference -> loose tolerance
        assert jnp.allclose(out, ref, atol=1.5e-2, rtol=1.5e-2), \
            f"mismatch vs reference (scale={scale})"

    print("KERNEL_OK")
</pallas_src>

<mosaic_0001>
module attributes {stable_mosaic.version = 11 : i64} {
  func.func @_mha_head_kernel(%arg0: i32, %arg1: i32, %arg2: memref<1x8x32xbf16, #tpu.memory_space<vmem>>, %arg3: memref<1x32x8xbf16, #tpu.memory_space<vmem>>, %arg4: memref<1x32x8xbf16, #tpu.memory_space<vmem>>, %arg5: memref<1x32x8xbf16, #tpu.memory_space<vmem>>, %arg6: memref<1x1x8xf32, #tpu.memory_space<vmem>>, %arg7: memref<1x1x8xf32, #tpu.memory_space<vmem>>, %arg8: memref<1x1x8xf32, #tpu.memory_space<vmem>>, %arg9: memref<1x8x32xbf16, #tpu.memory_space<vmem>>, %arg10: memref<1x32xf32, #tpu.memory_space<vmem>>, %arg11: memref<1x8x32xf32, #tpu.memory_space<vmem>>) attributes {dimension_semantics = [#tpu.dimension_semantics<parallel>, #tpu.dimension_semantics<arbitrary>], iteration_bounds = array<i64: 2, 4>, scalar_prefetch = 0 : i64, scratch_operands = 0 : i64, tpu.core_type = #tpu.core_type<tc>, window_params = [{transform_indices = @transform_0, window_bounds = array<i64: 1, 8, 32>}, {transform_indices = @transform_1, window_bounds = array<i64: 1, 32, 8>}, {transform_indices = @transform_2, window_bounds = array<i64: 1, 32, 8>}, {transform_indices = @transform_3, window_bounds = array<i64: 1, 32, 8>}, {transform_indices = @transform_4, window_bounds = array<i64: 1, 1, 8>}, {transform_indices = @transform_5, window_bounds = array<i64: 1, 1, 8>}, {transform_indices = @transform_6, window_bounds = array<i64: 1, 1, 8>}, {transform_indices = @transform_7, window_bounds = array<i64: 1, 8, 32>}, {pipeline_mode = #tpu.pipeline_mode<synchronous>, transform_indices = @transform_8, window_bounds = array<i64: 1, 32>}, {transform_indices = @transform_9, window_bounds = array<i64: 1, 8, 32>}]} {
    %c0 = arith.constant 0 : index
    %c0_0 = arith.constant 0 : index
    %c0_1 = arith.constant 0 : index
    %0 = vector.load %arg2[%c0, %c0_0, %c0_1] : memref<1x8x32xbf16, #tpu.memory_space<vmem>>, vector<1x8x32xbf16>
    %1 = vector.shape_cast %0 : vector<1x8x32xbf16> to vector<8x32xbf16>
    %c0_2 = arith.constant 0 : index
    %c0_3 = arith.constant 0 : index
    %c0_4 = arith.constant 0 : index
    %2 = vector.load %arg3[%c0_2, %c0_3, %c0_4] : memref<1x32x8xbf16, #tpu.memory_space<vmem>>, vector<1x32x8xbf16>
    %3 = vector.shape_cast %2 : vector<1x32x8xbf16> to vector<32x8xbf16>
    %cst = arith.constant dense<0.000000e+00> : vector<8x8xf32>
    %4 = tpu.matmul %1, %3, %cst {dimension_numbers = #tpu.dot_dimension_numbers<[1], [0], [0], [1], [0, 0, 1, 1], [], []>} : vector<8x32xbf16>, vector<32x8xbf16>, vector<8x8xf32> -> vector<8x8xf32>
    %c0_5 = arith.constant 0 : index
    %c0_6 = arith.constant 0 : index
    %c0_7 = arith.constant 0 : index
    %5 = vector.load %arg6[%c0_5, %c0_6, %c0_7] : memref<1x1x8xf32, #tpu.memory_space<vmem>>, vector<1x1x8xf32>
    %6 = vector.shape_cast %5 : vector<1x1x8xf32> to vector<1x8xf32>
    %7 = vector.broadcast %6 : vector<1x8xf32> to vector<8x8xf32>
    %8 = arith.addf %4, %7 : vector<8x8xf32>
    %c0_8 = arith.constant 0 : index
    %c0_9 = arith.constant 0 : index
    %c0_10 = arith.constant 0 : index
    %9 = vector.load %arg4[%c0_8, %c0_9, %c0_10] : memref<1x32x8xbf16, #tpu.memory_space<vmem>>, vector<1x32x8xbf16>
    %10 = vector.shape_cast %9 : vector<1x32x8xbf16> to vector<32x8xbf16>
    %cst_11 = arith.constant dense<0.000000e+00> : vector<8x8xf32>
    %11 = tpu.matmul %1, %10, %cst_11 {dimension_numbers = #tpu.dot_dimension_numbers<[1], [0], [0], [1], [0, 0, 1, 1], [], []>} : vector<8x32xbf16>, vector<32x8xbf16>, vector<8x8xf32> -> vector<8x8xf32>
    %c0_12 = arith.constant 0 : index
    %c0_13 = arith.constant 0 : index
    %c0_14 = arith.constant 0 : index
    %12 = vector.load %arg7[%c0_12, %c0_13, %c0_14] : memref<1x1x8xf32, #tpu.memory_space<vmem>>, vector<1x1x8xf32>
    %13 = vector.shape_cast %12 : vector<1x1x8xf32> to vector<1x8xf32>
    %14 = vector.broadcast %13 : vector<1x8xf32> to vector<8x8xf32>
    %15 = arith.addf %11, %14 : vector<8x8xf32>
    %c0_15 = arith.constant 0 : index
    %c0_16 = arith.constant 0 : index
    %c0_17 = arith.constant 0 : index
    %16 = vector.load %arg5[%c0_15, %c0_16, %c0_17] : memref<1x32x8xbf16, #tpu.memory_space<vmem>>, vector<1x32x8xbf16>
    %17 = vector.shape_cast %16 : vector<1x32x8xbf16> to vector<32x8xbf16>
    %cst_18 = arith.constant dense<0.000000e+00> : vector<8x8xf32>
    %18 = tpu.matmul %1, %17, %cst_18 {dimension_numbers = #tpu.dot_dimension_numbers<[1], [0], [0], [1], [0, 0, 1, 1], [], []>} : vector<8x32xbf16>, vector<32x8xbf16>, vector<8x8xf32> -> vector<8x8xf32>
    %c0_19 = arith.constant 0 : index
    %c0_20 = arith.constant 0 : index
    %c0_21 = arith.constant 0 : index
    %19 = vector.load %arg8[%c0_19, %c0_20, %c0_21] : memref<1x1x8xf32, #tpu.memory_space<vmem>>, vector<1x1x8xf32>
    %20 = vector.shape_cast %19 : vector<1x1x8xf32> to vector<1x8xf32>
    %21 = vector.broadcast %20 : vector<1x8xf32> to vector<8x8xf32>
    %22 = arith.addf %18, %21 : vector<8x8xf32>
    %23 = arith.truncf %8 : vector<8x8xf32> to vector<8x8xbf16>
    %24 = arith.truncf %15 : vector<8x8xf32> to vector<8x8xbf16>
    %cst_22 = arith.constant dense<0.000000e+00> : vector<8x8xf32>
    %25 = tpu.matmul %23, %24, %cst_22 {dimension_numbers = #tpu.dot_dimension_numbers<[1], [1], [0], [0], [0, 0, 1, 0], [], []>} : vector<8x8xbf16>, vector<8x8xbf16>, vector<8x8xf32> -> vector<8x8xf32>
    %cst_23 = arith.constant dense<0xFF800000> : vector<8xf32>
    %26 = vector.multi_reduction <maximumf>, %25, %cst_23 [1] : vector<8x8xf32> to vector<8xf32>
    %27 = vector.shape_cast %26 : vector<8xf32> to vector<8x1xf32>
    %28 = vector.broadcast %27 : vector<8x1xf32> to vector<8x8xf32>
    %29 = arith.subf %25, %28 : vector<8x8xf32>
    %30 = math.exp %29 : vector<8x8xf32>
    %cst_24 = arith.constant dense<0.000000e+00> : vector<8xf32>
    %31 = vector.multi_reduction <add>, %30, %cst_24 [1] : vector<8x8xf32> to vector<8xf32>
    %32 = vector.shape_cast %31 : vector<8xf32> to vector<8x1xf32>
    %33 = tpu.reciprocal %32 {approx = true} : vector<8x1xf32> -> vector<8x1xf32>
    %34 = arith.truncf %30 : vector<8x8xf32> to vector<8x8xbf16>
    %35 = arith.truncf %22 : vector<8x8xf32> to vector<8x8xbf16>
    %cst_25 = arith.constant dense<0.000000e+00> : vector<8x8xf32>
    %36 = tpu.matmul %34, %35, %cst_25 {dimension_numbers = #tpu.dot_dimension_numbers<[1], [0], [0], [1], [0, 0, 1, 1], [], []>} : vector<8x8xbf16>, vector<8x8xbf16>, vector<8x8xf32> -> vector<8x8xf32>
    %37 = vector.broadcast %33 : vector<8x1xf32> to vector<8x8xf32>
    %38 = arith.mulf %36, %37 : vector<8x8xf32>
    %39 = arith.truncf %38 : vector<8x8xf32> to vector<8x8xbf16>
    %c0_26 = arith.constant 0 : index
    %c0_27 = arith.constant 0 : index
    %c0_28 = arith.constant 0 : index
    %40 = vector.load %arg9[%c0_26, %c0_27, %c0_28] : memref<1x8x32xbf16, #tpu.memory_space<vmem>>, vector<1x8x32xbf16>
    %41 = vector.shape_cast %40 : vector<1x8x32xbf16> to vector<8x32xbf16>
    %cst_29 = arith.constant dense<0.000000e+00> : vector<8x32xf32>
    %42 = tpu.matmul %39, %41, %cst_29 {dimension_numbers = #tpu.dot_dimension_numbers<[1], [0], [0], [1], [0, 0, 1, 1], [], []>} : vector<8x8xbf16>, vector<8x32xbf16>, vector<8x32xf32> -> vector<8x32xf32>
    %c0_i32 = arith.constant 0 : i32
    %43 = arith.cmpi eq, %arg1, %c0_i32 : i32
    %44 = arith.extui %43 : i1 to i32
    %c0_i32_30 = arith.constant 0 : i32
    %45 = arith.cmpi ne, %44, %c0_i32_30 : i32
    scf.if %45 {
      %c0_33 = arith.constant 0 : index
      %c0_34 = arith.constant 0 : index
      %49 = vector.load %arg10[%c0_33, %c0_34] : memref<1x32xf32, #tpu.memory_space<vmem>>, vector<1x32xf32>
      %50 = vector.broadcast %49 : vector<1x32xf32> to vector<8x32xf32>
      %51 = arith.addf %42, %50 : vector<8x32xf32>
      %c0_35 = arith.constant 0 : index
      %c0_36 = arith.constant 0 : index
      %c0_37 = arith.constant 0 : index
      %52 = vector.load %arg11[%c0_35, %c0_36, %c0_37] : memref<1x8x32xf32, #tpu.memory_space<vmem>>, vector<1x8x32xf32>
      %53 = vector.shape_cast %52 : vector<1x8x32xf32> to vector<8x32xf32>
      %54 = vector.shape_cast %51 : vector<8x32xf32> to vector<1x8x32xf32>
      tpu.vector_store %arg11[%c0_35, %c0_36, %c0_37], %54 {strides = array<i32>} : memref<1x8x32xf32, #tpu.memory_space<vmem>>, vector<1x8x32xf32>,
    } else {
    }
    %c0_i32_31 = arith.constant 0 : i32
    %46 = arith.cmpi sgt, %arg1, %c0_i32_31 : i32
    %47 = arith.extui %46 : i1 to i32
    %c0_i32_32 = arith.constant 0 : i32
    %48 = arith.cmpi ne, %47, %c0_i32_32 : i32
    scf.if %48 {
      %c0_33 = arith.constant 0 : index
      %c0_34 = arith.constant 0 : index
      %c0_35 = arith.constant 0 : index
      %49 = vector.load %arg11[%c0_33, %c0_34, %c0_35] : memref<1x8x32xf32, #tpu.memory_space<vmem>>, vector<1x8x32xf32>
      %50 = vector.shape_cast %49 : vector<1x8x32xf32> to vector<8x32xf32>
      %51 = arith.addf %50, %42 : vector<8x32xf32>
      %c0_36 = arith.constant 0 : index
      %c0_37 = arith.constant 0 : index
      %c0_38 = arith.constant 0 : index
      %52 = vector.load %arg11[%c0_36, %c0_37, %c0_38] : memref<1x8x32xf32, #tpu.memory_space<vmem>>, vector<1x8x32xf32>
      %53 = vector.shape_cast %52 : vector<1x8x32xf32> to vector<8x32xf32>
      %54 = vector.shape_cast %51 : vector<8x32xf32> to vector<1x8x32xf32>
      tpu.vector_store %arg11[%c0_36, %c0_37, %c0_38], %54 {strides = array<i32>} : memref<1x8x32xf32, #tpu.memory_space<vmem>>, vector<1x8x32xf32>,
    } else {
    }
    return
  }
  func.func @transform_0(%arg0: i32, %arg1: i32) -> (i32, i32, i32) {
    %c0_i32 = arith.constant 0 : i32
    %c0_i32_0 = arith.constant 0 : i32
    %c0_i32_1 = arith.constant 0 : i32
    return %arg0, %c0_i32, %c0_i32_0 : i32, i32, i32
  }
  func.func @transform_1(%arg0: i32, %arg1: i32) -> (i32, i32, i32) {
    %c0_i32 = arith.constant 0 : i32
    %c0_i32_0 = arith.constant 0 : i32
    %c0_i32_1 = arith.constant 0 : i32
    return %arg1, %c0_i32, %c0_i32_0 : i32, i32, i32
  }
  func.func @transform_2(%arg0: i32, %arg1: i32) -> (i32, i32, i32) {
    %c0_i32 = arith.constant 0 : i32
    %c0_i32_0 = arith.constant 0 : i32
    %c0_i32_1 = arith.constant 0 : i32
    return %arg1, %c0_i32, %c0_i32_0 : i32, i32, i32
  }
  func.func @transform_3(%arg0: i32, %arg1: i32) -> (i32, i32, i32) {
    %c0_i32 = arith.constant 0 : i32
    %c0_i32_0 = arith.constant 0 : i32
    %c0_i32_1 = arith.constant 0 : i32
    return %arg1, %c0_i32, %c0_i32_0 : i32, i32, i32
  }
  func.func @transform_4(%arg0: i32, %arg1: i32) -> (i32, i32, i32) {
    %c0_i32 = arith.constant 0 : i32
    %c0_i32_0 = arith.constant 0 : i32
    %c0_i32_1 = arith.constant 0 : i32
    return %arg1, %c0_i32, %c0_i32_0 : i32, i32, i32
  }
  func.func @transform_5(%arg0: i32, %arg1: i32) -> (i32, i32, i32) {
    %c0_i32 = arith.constant 0 : i32
    %c0_i32_0 = arith.constant 0 : i32
    %c0_i32_1 = arith.constant 0 : i32
    return %arg1, %c0_i32, %c0_i32_0 : i32, i32, i32
  }
  func.func @transform_6(%arg0: i32, %arg1: i32) -> (i32, i32, i32) {
    %c0_i32 = arith.constant 0 : i32
    %c0_i32_0 = arith.constant 0 : i32
    %c0_i32_1 = arith.constant 0 : i32
    return %arg1, %c0_i32, %c0_i32_0 : i32, i32, i32
  }
  func.func @transform_7(%arg0: i32, %arg1: i32) -> (i32, i32, i32) {
    %c0_i32 = arith.constant 0 : i32
    %c0_i32_0 = arith.constant 0 : i32
    %c0_i32_1 = arith.constant 0 : i32
    return %arg1, %c0_i32, %c0_i32_0 : i32, i32, i32
  }
  func.func @transform_8(%arg0: i32, %arg1: i32) -> (i32, i32) {
    %c0_i32 = arith.constant 0 : i32
    %c0_i32_0 = arith.constant 0 : i32
    %c0_i32_1 = arith.constant 0 : i32
    return %c0_i32, %c0_i32_0 : i32, i32
  }
  func.func @transform_9(%arg0: i32, %arg1: i32) -> (i32, i32, i32) {
    %c0_i32 = arith.constant 0 : i32
    %c0_i32_0 = arith.constant 0 : i32
    %c0_i32_1 = arith.constant 0 : i32
    return %arg0, %c0_i32, %c0_i32_0 : i32, i32, i32
  }
}

</mosaic_0001>

<bundles_post_ra>
// kernel: tpu_custom_call.1
= control target key start
LH: loop header
LB: loop body
LE: loop exit
PB: predicated region body
PF: predicated region fallthrough
CT: control target
= control target key end

     0   :  { %14 = vsyncpa [#allocation3], 0  ;;  %s1511_s0 = inlined_call_operand.vmem [shape: bf16[2,8,32], index: 0, kind: input, shape index: {}]   ;;  %s1512_s1 = inlined_call_operand.vmem [shape: bf16[4,32,8], index: 1, kind: input, shape index: {}]   ;;  %s1513_s2 = inlined_call_operand.vmem [shape: bf16[4,32,8], index: 2, kind: input, shape index: {}]   ;;  %s1514_s3 = inlined_call_operand.vmem [shape: bf16[4,32,8], index: 3, kind: input, shape index: {}]   ;;  %s1515_s4 = inlined_call_operand.vmem [shape: f32[4,1,8], index: 4, kind: input, shape index: {}]   ;;  %s1516_s5 = inlined_call_operand.vmem [shape: f32[4,1,8], index: 5, kind: input, shape index: {}]   ;;  %s1517_s6 = inlined_call_operand.vmem [shape: f32[4,1,8], index: 6, kind: input, shape index: {}]   ;;  %s1518_s7 = inlined_call_operand.vmem [shape: bf16[4,8,32], index: 7, kind: input, shape index: {}]   ;;  %s1519_s8 = inlined_call_operand.vmem [shape: f32[1,32], index: 8, kind: input, shape index: {}]   ;;  %s1520_s9 = inlined_call_operand.hbm [shape: f32[2,8,32], index: 9, kind: output, shape index: {}]  }
   0x1   :  { %16 = vsyncpa [#allocation3 + $0x1], 0  ;;  %s1316_s30 = smov 0   ;;  %s1318_s10 = smov 0  }
   0x2   :  { %s1320_s11 = smov 0   ;;  %s1322_s12 = smov 0  }
   0x3   :  { %s1324_s13 = smov 0   ;;  %s1326_s14 = smov 0  }
   0x4   :  { %s1328_s15 = smov 0   ;;  %s1330_s16 = smov 0  }
   0x5 LB: > { %1526 = sst [smem:[#allocation5_spill]] %s1241_s11  ;;  %s990_s17 = sadd.s32 4294967295, %s1261_s16   ;;  %s1261_s16 = sphi %s1330_s16, %s22_s16   ;;  %s1257_s15 = sphi %s1328_s15, %s1540_s15   ;;  %s1253_s14 = sphi %s1326_s14, %s1539_s14   ;;  %s1249_s13 = sphi %s1324_s13, %s1538_s13   ;;  %s1245_s12 = sphi %s1322_s12, %s1537_s12   ;;  %s1241_s11 = sphi %s1320_s11, %s1536_s11   ;;  %s1237_s10 = sphi %s1318_s10, %s1542_s10   ;;  %s1233_s30 = sphi %s1316_s30, %s1541_s30  }
   0x6   : > { %1527 = sst [smem:[#allocation6_spill]] %s1253_s14  ;;  %s991_s18 = sadd.s32 4294967294, %s1261_s16  }
   0x7   : > { %1528 = sst [smem:[#allocation7_spill]] %s1257_s15  ;;  %s31_s19 = sadd.s32 1, %s1253_s14 }
   0x8   : > { %p32_p0 = scmp.ge.s32.totalorder %s31_s19, 4  ;;  %s34_s20 = sadd.s32 1, %s1257_s15 }
   0x9   : > { %p280_p1 = scmp.ne.s32.totalorder %s1241_s11, %s1237_s10  ;;  %p281_p2 = scmp.eq.s32.totalorder %s990_s17, 7 }
   0xa   : > { %s1544_s19 = smov (%p32_p0, %s31_s19), 0  ;;  %s1546_s20 = smov (!%p32_p0, %s34_s20), %s1257_s15 }
   0xb   : > { %1529 = sst [smem:[#allocation8_spill]] %s1544_s19  ;;  %p1365_p3 = por %p281_p2, %p280_p1 }
   0xc   : > { %p286_p4 = scmp.ne.s32.totalorder %s1237_s10, %s1233_s30  ;;  %p36_p5 = scmp.ge.s32.totalorder %s1546_s20, 2 }
   0xd   : > { %p287_p6 = scmp.eq.s32.totalorder %s991_s18, 7  ;;  %p994_p7 = scmp.ge.s32.totalorder %s1261_s16, 1 }
   0xe   : > { %p364_p8 = scmp.lt.s32.totalorder %s1261_s16, 9  ;;  %s1548_s20 = smov (%p36_p5, %s1546_s20), 0 }
   0xf   : > { %1531 = sst [smem:[#allocation9_spill]] %s1548_s20  ;;  %p1375_p9 = por %p287_p6, %p286_p4 }
  0x10   : > { %p365_p10 = pnand %p994_p7, %p364_p8  ;;  %s267_s23 = ssub.s32 %s1257_s15, %s1548_s20 }
  0x11   : > { %s270_s24 = sadd.s32 1, %s1241_s11  ;;  %p268_p11 = scmp.eq.s32.totalorder %s267_s23, 0 }
  0x12   : > { %368 = sbr.rel (%p365_p10) target bundleno = 1027 (0x403), region = 56  ;;  %p431_p12 = scmp.lt.s32.totalorder (!%p365_p10), %s1245_s12, 3 }
  0x13   : > { %s1383_s25 = scalar_select %p268_p11, %s1241_s11, %s270_s24  }
  0x14   : > { %s1521_s26 = sand.u32 (!%p365_p10), 1, %s1237_s10   ;;  %p427_p13 = scmp.lt.s32.totalorder (!%p365_p10), %s1249_s13, 1 }
  0x15   : > { %1533 = sst [smem:[#allocation10_spill]] %s1383_s25  ;;  %s1390_s27 = sshll.u32 (!%p365_p10), %s1521_s26, 3 }
  0x16   : > { %p1019_p0 = scmp.ne.s32.totalorder (!%p365_p10), %s1245_s12, 0 }
  0x17   : > { %v1263_v0 = vmov 0.0   ;;  %s1394_s28 = scalar_select %p431_p12, %s1245_s12, 3  ;;  %vm1264_vm0 = vmmov 0   ;;  %vm484_vm1 = vcmask 261120   ;;  %vm656_vm2 = vcmask 64512  }
  0x18   : > { %1052 = vmatprep.subr.bf16.mxu1 %v1263_v0  ;;  %1044 = vmatprep.subr.bf16.mxu0 %v1263_v0  ;;  %s428_s19 = scalar_select %p427_p13, %s1249_s13, 1  ;;  %vm718_vm3 = vcmask 1043456  }
  0x19   : > { %1056 = vmatprep.mubr.msk.bf16.mxu1 %vm1264_vm0, %v1263_v0  ;;  %1048 = vmatprep.mubr.msk.bf16.mxu0 %vm1264_vm0, %v1263_v0  ;;  %s1026_s29 = sshll.u32 %s1394_s28, 4  ;;  %s451_s15 = scalar_lea.vmem %s1516_s5, %s1394_s28 }
  0x1a   : > { %s440_s23 = scalar_lea.vmem %s1513_s2, %s1026_s29  ;;  %s435_s20 = scalar_lea.vmem %s1512_s1, %s1026_s29  ;;  %v1008_v8 = vld [vmem:[%s451_s15] ss:$0 sm:$0xff] }
  0x1b   : > { %v1159_v1 = vld [vmem:[%s440_s23 + $0x8] sm:$0xff]   ;;  %v1161_v3 = vld [vmem:[%s440_s23] sm:$0xff]   ;;  %s445_s25 = scalar_lea.vmem %s1514_s3, %s1026_s29  ;;  %s996_s11 = sshll.u32 %s428_s19, 2 }
  0x1c   : > { %v1160_v2 = vld [vmem:[%s435_s20 + $0x8] sm:$0xff]   ;;  %1053 = vmatpush3.bf16.msra.mxu1 %v1159_v1  ;;  %v1162_v4 = vld [vmem:[%s435_s20] sm:$0xff]   ;;  %s430_s26 = scalar_lea.vmem %s1511_s0, %s996_s11  ;;  %s448_s29 = scalar_lea.vmem %s1515_s4, %s1394_s28 }
  0x1d   : > { %1045 = vmatpush3.bf16.msra.mxu0 %v1160_v2  ;;  %1054 = vmatprep.subr.bf16.mxu1 %v1263_v0  ;;  %v460_v5 = vld [vmem:[%s430_s26] sm:$0xf]  ;;  %v1163_v6 = vld [vmem:[%s445_s25 + $0x8] sm:$0xff]   ;;  %s454_s24 = scalar_lea.vmem %s1517_s6, %s1394_s28  ;;  %s1003_s17 = sshll.u32 %s1394_s28, 2 }
  0x1e   : > { %1046 = vmatprep.subr.bf16.mxu0 %v1263_v0  ;;  %v1164_v7 = vld [vmem:[%s445_s25] sm:$0xff]   ;;  %s458_s11 = scalar_lea.vmem %s1518_s7, %s1003_s17  ;;  %s426_s28 = scalar_lea.vmem [#allocation2], %s1390_s27 }
  0x1f   : > { %v1004_v13 = vld [vmem:[%s448_s29] ss:$0 sm:$0xff] }
  0x20   : > { %1055 = vmatpush3.bf16.msra.mxu1 %v1161_v3  ;;  %v1012_v29 = vld [vmem:[%s454_s24] ss:$0 sm:$0xff] }
  0x21   : > { %1047 = vmatpush3.bf16.msra.mxu0 %v1162_v4  ;;  %1068 = vmatprep.subr.bf16.mxu1 %v1263_v0  ;;  %v764_v42 = vld [vmem:[%s458_s11] sm:$0xf] }
  0x22   : > { %1060 = vmatprep.subr.bf16.mxu0 %v1263_v0  ;;  %v769_v43 = vsel %vm718_vm3, %v764_v42, 0 }
  0x23   : > { %1057 = vmatmul.mubr.msk.bf16.vlgmr.msra.gmra.mxu1 %vm484_vm1, %v460_v5 }
  0x24   : > { %1049 = vmatmul.mubr.msk.bf16.vlgmr.msra.gmra.mxu0 %vm484_vm1, %v460_v5  ;;  %1070 = vmatprep.mubr.msk.bf16.mxu1 %vm1264_vm0, %v1263_v0 }
  0x25   : > { %1064 = vmatprep.mubr.msk.bf16.mxu0 %vm1264_vm0, %v1263_v0  ;;  %1061 = vmatpush3.bf16.msra.mxu0 %v1163_v6 }
  0x26   : > { %1062 = vmatprep.subr.bf16.mxu0 %v1263_v0 }
  0x29   : > { %1063 = vmatpush3.bf16.msra.mxu0 %v1164_v7 }
  0x2a   : > { %1074 = vmatprep.subr.bf16.mxu0 %v1263_v0 }
  0x2c   : > { %1065 = vmatmul.mubr.msk.bf16.vlgmr.msra.gmra.mxu0 %vm484_vm1, %v460_v5 }
  0x2d   : > { %1076 = vmatprep.mubr.msk.bf16.mxu0 %vm1264_vm0, %v1263_v0 }
  0xe3   : > { %v585_v9 = vpop.f32.mrf.mxu1 }
  0xe4   : > { %v586_v10 = vadd.f32 %v1008_v8, %v585_v9  ;;  %v522_v11 = vpop.f32.mrf.mxu0 }
  0xe5   : > { %v1058_v12 = vpop.f32.mrf.mxu1  ;;  %v523_v18 = vadd.f32 %v1004_v13, %v522_v11 }
  0xe6   : > { %v655_v14 = vpack.c.bf16 %v586_v10, %v586_v10  ;;  %v1050_v15 = vpop.f32.mrf.mxu0 }
  0xe7   : > { %v588_v16 = vpop.f32.mrf.mxu1  ;;  %v654_v22 = vpack.c.bf16 %v523_v18, %v523_v18 }
  0xe8   : > { %v661_v17 = vsel %vm656_vm2, %v655_v14, 0  ;;  %v525_v19 = vpop.f32.mrf.mxu0 }
  0xe9   : > { %v1059_v20 = vpop.f32.mrf.mxu1  ;;  %1069 = vmatpush3.bf16.xpose.msra.mxu1 %v661_v17 }
  0xea   : > { %v1051_v21 = vpop.f32.mrf.mxu0  ;;  %1080 = vmatprep.subr.bf16.mxu1 %v1263_v0 }
  0xec   : > { %v648_v28 = vpop.f32.mrf.mxu0 }
  0xed   : > { %v649_v30 = vadd.f32 %v1012_v29, %v648_v28 }
  0xee   : > { %v1066_v31 = vpop.f32.mrf.mxu0 }
  0xef   : > { %v714_v32 = vpack.c.bf16 %v649_v30, %v649_v30 }
  0xf0   : > { %1071 = vmatmul.mubr.msk.bf16.vlgmr.msra.gmra.mxu1 %vm656_vm2, %v654_v22  ;;  %v651_v33 = vpop.f32.mrf.mxu0 }
  0xf1   : > { %1082 = vmatprep.mubr.msk.bf16.mxu1 %vm1264_vm0, %v1263_v0  ;;  %v720_v34 = vsel %vm718_vm3, %v714_v32, 0  ;;  %1081 = vmatpush3.bf16.msra.mxu1 %v769_v43 }
  0xf2   : > { %v1067_v35 = vpop.f32.mrf.mxu0  ;;  %1075 = vmatpush3.bf16.msra.mxu0 %v720_v34 }
 0x1b0   : > { %v697_v23 = vpop.f32.mrf.mxu1 }
 0x1b1   : > { %v703_v24 = vsel %vm656_vm2, %v697_v23, -inf }
 0x1b2   : > { %704 = vmax.xlane.f32.xlu0 %v703_v24  ;;  %v1072_v25 = vpop.f32.mrf.mxu1 }
 0x1b4   : > { %v700_v26 = vpop.f32.mrf.mxu1 }
 0x1b6   : > { %v1073_v27 = vpop.f32.mrf.mxu1 }
 0x23b   : > { %v705_v36 = vpop.xlane.xlu0 %704 }
 0x23c   : > { %v706_v37 = vsub.f32 %v697_v23, %v705_v36 }
 0x23e   : > { %v707_v38 = vmul.f32 1.442695, %v706_v37 }
 0x240   : > { %1165 = vpow2.f32 %v707_v38 }
 0x24d   : > { %v1166_v39 = vpop.eup %1165 }
 0x24e   : > { %v709_v40 = vsel %vm656_vm2, %v1166_v39, 0.0  ;;  %v713_v41 = vpack.c.bf16 %v1166_v39, %v1166_v39 }
 0x24f   : > { %710 = vadd.xlane.f32.xlu0 %v709_v40 }
 0x250   : > { %1077 = vmatmul.mubr.msk.bf16.vlgmr.msra.gmra.mxu0 %vm656_vm2, %v713_v41 }
 0x2d8   : > { %v711_v44 = vpop.xlane.xlu0 %710 }
 0x2d9   : > { %1167 = vrcp.f32 %v711_v44 }
 0x2e6   : > { %v1168_v45 = vpop.eup %1167 }
 0x310   : > { %v756_v46 = vpop.f32.mrf.mxu0 }
 0x311   : > { %v762_v47 = vmul.f32 %v1168_v45, %v756_v46 }
 0x312   : > { %v1078_v48 = vpop.f32.mrf.mxu0 }
 0x313   : > { %v763_v49 = vpack.c.bf16 %v762_v47, %v762_v47 }
 0x314   : > { %v759_v50 = vpop.f32.mrf.mxu0 }
 0x315   : > { %1083 = vmatmul.mubr.msk.bf16.vlgmr.msra.gmra.mxu1 %vm656_vm2, %v763_v49 }
 0x316   : > { %v1079_v51 = vpop.f32.mrf.mxu0 }
 0x3d5   : > { %v805_v52 = vpop.f32.mrf.mxu1 }
 0x3d7   : > { %v1084_v53 = vpop.f32.mrf.mxu1  ;;  %814 = sbr.rel (%p1019_p0) target bundleno = 992 (0x3e0), region = 60 }
 0x3d9   : > { %v808_v54 = vpop.f32.mrf.mxu1 }
 0x3db   : > { %v1085_v55 = vpop.f32.mrf.mxu1 }
 0x3dc   : > { %v1020_v56 = vld [vmem:[%s1519_s8] ss:$0 sm:$0xff] }
 0x3dd   : > { %v822_v57 = vadd.f32 %v1020_v56, %v805_v52 }
 0x3df   : > { %823 = vst.msk [vmem:[%s426_s28] sm:$0xff] %vm484_vm1, %v822_v57 }
 0x3e0 PF: > { %p1021_p1 = scmp.le.s32.totalorder %s1245_s12, 0 }
 0x3e2   : > { %827 = sbr.rel (%p1021_p1) target bundleno = 1003 (0x3eb), region = 64 }
 0x3e7   : > { %v828_v58 = vld [vmem:[%s426_s28] sm:$0xff] }
 0x3e8   : > { %v829_v59 = vadd.f32 %v828_v58, %v805_v52 }
 0x3ea   : > { %830 = vst.msk [vmem:[%s426_s28] sm:$0xff] %vm484_vm1, %v829_v59 }
 0x3eb PF: > { %s1023_s27 = sshll.u32 %s1249_s13, 7  ;;  %s845_s25 = sshll.u32 %s426_s28, 4  ;;  %s846_s25 = int_to_ptr.vmem [resolvable:$true] %s845_s25 }
 0x3ec   : > { %s843_s29 = scalar_lea.hbm %s1520_s9, %s1023_s27  ;;  %s1534_s23 = sand.u32 1, %s1237_s10  }
 0x3ed   : > { %s832_s24 = scalar_lea.sflag [#allocation3], %s1534_s23  ;;  %s1169_s17 = scalar_lea.vmem %s846_s25, 128 }
 0x3ee   : > { %p1170_p2 = scmp.ne.s32.totalorder %s846_s25, %s1169_s17  ;;  %s1265_s12 = smov [#allocation2]  }
 0x3ef   : > { %s1173_s18 = sshll.u32 %s1265_s12, 4  ;;  %s1174_s18 = int_to_ptr.vmem [resolvable:$false] %s1173_s18 }
 0x3f0   : > { %p1171_p4 = pnand %p1170_p2, %p1365_p3  ;;  %s1175_s26 = scalar_lea.vmem %s1174_s18, 256 }
 0x3f1   : > { %p1176_p6 = scmp.lt.s32.totalorder %s846_s25, %s1174_s18  ;;  %p1177_p7 = scmp.lt.s32.totalorder %s1175_s26, %s1169_s17 }
 0x3f2   : > { %p1172_p5 = pneg %p1171_p4 }
 0x3f3   : > { %p1178_p8 = por %p1177_p7, %p1176_p6 }
 0x3f5   : > { %p1179_p10 = pnand %p1178_p8, %p1172_p5 }
 0x3f7   : > { %1182 = shalt.err (!%p1179_p10)
}
 0x3f8   : > { %s1183_s13 = scalar_lea.hbm %s843_s29, 128  ;;  %s1187_s14 = scalar_lea.hbm %s1520_s9, 256 }
 0x3f9   : > { %p1184_p11 = scmp.ne.s32.totalorder %s843_s29, %s1183_s13  ;;  %p1188_p0 = scmp.lt.s32.totalorder %s843_s29, %s1520_s9 }
 0x3fa   : > { %p1189_p1 = scmp.lt.s32.totalorder %s1187_s14, %s1183_s13 }
 0x3fb   : > { %p1185_p12 = pnand %p1184_p11, %p1365_p3 }
 0x3fc   : > { %p1190_p2 = por %p1189_p1, %p1188_p0 }
 0x3fd   : > { %p1186_p13 = pneg %p1185_p12 }
 0x3ff   : > { %p1191_p4 = pnand %p1190_p2, %p1186_p13 }
 0x401   : > { %1194 = shalt.err (!%p1191_p4)
}
 0x402   : > { %1086 = dma.vmem_to_hbm [thread:$0]  (%p1365_p3), %s846_s25, 128, %s843_s29, %s832_s24  }
 0x403 PF: > { %p1092_p5 = scmp.ge.s32.totalorder %s1261_s16, 2  ;;  %s857_s19 = sand.u32 1, %s1233_s30  }
 0x404   : > { %s858_s20 = scalar_lea.sflag [#allocation3], %s857_s19 }
 0x405   : > { %p1089_p6 = pnand %p1092_p5, %p1375_p9 }
 0x407   : > { %p1090_p7 = pneg %p1089_p6 }
 0x409   : > { %1228 = dma.done.wait (%p1090_p7), %s858_s20, 128  }
 0x40a   : > { %1230 = vsyncadd (%p1090_p7), %s858_s20, 4294967168  ;;  %s22_s16 = sadd.s32 1, %s1261_s16   ;;  %s1535_s23 = sld [smem:[#allocation5_spill]] }
 0x40b   : > { %p19_p8 = scmp.ge.s32.totalorder %s22_s16, 10   ;;  %s1536_s11 = sld [smem:[#allocation10_spill]] }
 0x40c   : > { %s1537_s12 = sld [smem:[#allocation6_spill]]  ;;  %s1541_s30 = smov %s1237_s10 }
 0x40d   : > { %s1538_s13 = sld [smem:[#allocation7_spill]]  ;;  %21 = sbr.rel (!%p19_p8) target bundleno = 5 (0x5), region = 120 }
 0x40e   : > { %s1539_s14 = sld [smem:[#allocation8_spill]] }
 0x40f   : > { %s1540_s15 = sld [smem:[#allocation9_spill]] }
 0x410   : > { %s1542_s10 = smov %s1535_s23 }
 0x412   :  { %863 = vsyncpa [#allocation3], 1 }
 0x413   :  { %865 = vsyncpa [#allocation3 + $0x1], 1 }

</bundles_post_ra>
